<compile_context>
chip_gen: v5e
topology: v5e:2x2
jax: 0.10.0
libtpu: 0.0.40
codegen_flags: <defaults>
</compile_context>

<pallas_src>
import functools
import math

import jax
import jax.numpy as jnp
from jax.experimental import pallas as pl
from jax.experimental.pallas import tpu as pltpu

_SLAB_LANES = 512               # lane-dense slab width for the fallback path
_TARGET_BLOCK_BYTES = 2 << 20   # ~2 MiB per block per array -> 12 MiB double-buffered
_MAX_DIRECT_LANES = 65536       # keeps even a tm=8 block <= 2 MiB on the direct path
_SMALL_DIRECT_ELEMS = 256 * 1024  # padded-footprint cap for the ragged "small" fast path


def _round_up(x, m):
    return -(-x // m) * m


# ---------------------------------------------------------------------------
# Init-time glue: conformal quantile (matches torch.quantile(..., 'higher')).
# Runs eagerly at __init__ (uses host math for the index) — do not jit.
# ---------------------------------------------------------------------------
def conformal_quantile(scores, quantile):
    if not (0.0 <= quantile <= 1.0):
        raise Exception("quantile must be a real value in [0,1].")
    scores = jnp.asarray(scores, dtype=jnp.float32)
    n = int(scores.shape[0])
    # q = min(ceil((n+1)*quantile)/n, 1) computed in float32 like torch.
    q = jnp.minimum(
        jnp.ceil(jnp.float32(n + 1) * jnp.float32(quantile)) / jnp.float32(n),
        jnp.float32(1.0),
    )
    # torch.quantile(..., interpolation='higher') -> sorted[ceil(q*(n-1))]
    idx = int(math.ceil(float(q) * (n - 1)))
    idx = min(max(idx, 0), n - 1)
    return jnp.sort(scores)[idx]


# ---------------------------------------------------------------------------
# Pallas kernel: elementwise (pred - qhat, pred + qhat)
# ---------------------------------------------------------------------------
def _cp_interval_kernel(qhat_ref, pred_ref, lo_ref, hi_ref):
    qhat = qhat_ref[0]            # scalar qhat from SMEM (read once per tile)
    p = pred_ref[...]
    lo_ref[...] = p - qhat
    hi_ref[...] = p + qhat


def _run_kernel_2d(x2d, qhat_smem, tm, alias_input):
    """Launch the interval kernel over a 2-D array tiled along rows."""
    rows, cols = x2d.shape
    out_sd = jax.ShapeDtypeStruct((rows, cols), x2d.dtype)
    block = pl.BlockSpec((tm, cols), lambda i: (i, 0))
    elems = rows * cols
    extra = {"input_output_aliases": {1: 0}} if alias_input else {}
    return pl.pallas_call(
        _cp_interval_kernel,
        out_shape=(out_sd, out_sd),
        grid=(pl.cdiv(rows, tm),),           # partial last block handled by Pallas
        in_specs=[
            pl.BlockSpec(memory_space=pltpu.SMEM),   # qhat scalar
            block,                                   # prediction tile
        ],
        out_specs=(block, block),
        compiler_params=pltpu.CompilerParams(
            dimension_semantics=("parallel",)),      # shards rows across v7x's 2 TCs
        cost_estimate=pl.CostEstimate(
            flops=2 * elems,
            transcendentals=0,
            bytes_accessed=3 * elems * 4,            # 1 read + 2 writes, f32
        ),
        **extra,
    )(qhat_smem, x2d)


def _pick_row_tile(rows, cols, itemsize=4):
    """Row tile: ~2 MiB blocks, multiple of 8, and >=2 grid steps when possible."""
    if rows <= 8:
        return rows                                  # single full-rows block
    budget = max(8, (_TARGET_BLOCK_BYTES // (cols * itemsize)) // 8 * 8)
    tm = min(budget, _round_up(rows, 8))
    if tm >= rows:
        # Would be a single grid step: split rows so ("parallel",) can use both
        # TensorCores on v7x (no effect on v5e/v6e single-TC chips).
        half = _round_up(-(-rows // 2), 8)
        if half < rows:
            tm = half
    return tm


# ---------------------------------------------------------------------------
# Jitted paths (reshapes live inside jit so zero-copy views stay zero-copy)
# ---------------------------------------------------------------------------
@functools.partial(jax.jit, static_argnames=("rows", "cols", "tm"))
def _cp_direct(pred, qhat, *, rows, cols, tm):
    """Zero-copy path: kernel runs directly on a 2-D view of the prediction."""
    qhat_smem = jnp.reshape(qhat.astype(jnp.float32), (1,))
    x = pred.reshape(rows, cols)
    lo, hi = _run_kernel_2d(x, qhat_smem, tm, alias_input=False)
    return lo.reshape(pred.shape), hi.reshape(pred.shape)


@functools.partial(jax.jit, static_argnames=("rows", "lanes", "tm"))
def _cp_slab(pred, qhat, *, rows, lanes, tm):
    """Fallback path: lane-dense (rows, 512) slab with <8 rows of tail padding."""
    qhat_smem = jnp.reshape(qhat.astype(jnp.float32), (1,))
    size = pred.size
    padded = rows * lanes
    flat = pred.reshape(-1)
    did_pad = padded != size
    if did_pad:
        flat = jnp.pad(flat, (0, padded - size))
    slab = flat.reshape(rows, lanes)
    # Alias the (throwaway) padded slab to `lo` to save one HBM allocation.
    lo, hi = _run_kernel_2d(slab, qhat_smem, tm, alias_input=did_pad)
    lo = lo.reshape(-1)[:size].reshape(pred.shape)
    hi = hi.reshape(-1)[:size].reshape(pred.shape)
    return lo, hi


# ---------------------------------------------------------------------------
# Module-equivalent wrapper
# ---------------------------------------------------------------------------
class CPInferenceSingleRegionPallas:
    def __init__(self, conformity_scores, quantile=-1.0):
        quantile = float(quantile)
        if quantile > 1.0 or quantile < 0.0:
            raise Exception("quantile must be a real value in [0,1].")
        self.quantile = jnp.float32(quantile)
        self.conformity_scores = conformal_quantile(conformity_scores, quantile)  # qhat

    def __call__(self, prediction):
        prediction = jnp.asarray(prediction)
        if prediction.dtype != jnp.float32:
            # TODO(synk): PyTorch preserves the input dtype; we compute in float32.
            prediction = prediction.astype(jnp.float32)
        # Mirror `if len(prediction) == 1: prediction = prediction.unsqueeze(1)`
        if prediction.ndim >= 1 and prediction.shape[0] == 1:
            prediction = jnp.expand_dims(prediction, 1)

        qhat = self.conformity_scores
        size = int(prediction.size)
        if size == 0:
            return prediction, prediction - qhat, prediction + qhat

        if prediction.ndim >= 2:
            cols2d = int(prediction.shape[-1])
            rows2d = size // cols2d
        else:
            rows2d, cols2d = 1, size

        lane_dense = (cols2d % 128 == 0) and (cols2d <= _MAX_DIRECT_LANES)
        small = (_round_up(rows2d, 8) * _round_up(cols2d, 128)) <= _SMALL_DIRECT_ELEMS

        if lane_dense or small:
            # Zero-copy fast path: no pad, no slab, no output slicing.
            tm = _pick_row_tile(rows2d, cols2d)
            lo, hi = _cp_direct(prediction, qhat, rows=rows2d, cols=cols2d, tm=tm)
        else:
            # Large + ragged last dim: lane-dense slab, rows only 8-aligned.
            rows = _round_up(-(-size // _SLAB_LANES), 8)
            tm = _pick_row_tile(rows, _SLAB_LANES)
            lo, hi = _cp_slab(prediction, qhat, rows=rows, lanes=_SLAB_LANES, tm=tm)

        # Identity output returned directly (no extra HBM traffic in the kernel).
        return prediction, lo, hi


if __name__ == "__main__":
    key = jax.random.PRNGKey(0)
    k_scores, k_pred = jax.random.split(key)

    # Deterministic synthetic "calibration" conformity scores.
    n_cal = 100
    conformity_scores = jax.random.uniform(k_scores, (n_cal,), dtype=jnp.float32)
    module = CPInferenceSingleRegionPallas(conformity_scores, quantile=0.9)
    qhat = module.conformity_scores

    # Exercise all three paths:
    #   (8, 32)     -> small zero-copy full-block fast path (the demo shape)
    #   (256, 512)  -> lane-dense zero-copy tiled path, grid split for 2 TCs
    #   (2100, 130) -> ragged fallback: (rows, 512) slab + tail pad + aliasing
    #   (1, 40)     -> exercises the unsqueeze(1) semantics
    shapes = [(8, 32), (256, 512), (2100, 130), (1, 40)]
    keys = jax.random.split(k_pred, len(shapes))

    for shp, kk in zip(shapes, keys):
        prediction = jax.random.normal(kk, shp, dtype=jnp.float32)
        pred_out, lower, upper = module(prediction)
        jax.block_until_ready((pred_out, lower, upper))

        # Reference check in plain JAX.
        expect_pred = prediction if shp[0] != 1 else jnp.expand_dims(prediction, 1)
        assert pred_out.shape == expect_pred.shape
        assert jnp.array_equal(pred_out, expect_pred)
        assert jnp.allclose(lower, pred_out - qhat, atol=1e-6)
        assert jnp.allclose(upper, pred_out + qhat, atol=1e-6)

    print("KERNEL_OK")
</pallas_src>

<mosaic_0001>
module attributes {stable_mosaic.version = 11 : i64} {
  func.func @_cp_interval_kernel(%arg0: i32, %arg1: memref<1xf32, #tpu.memory_space<smem>>, %arg2: memref<8x32xf32, #tpu.memory_space<vmem>>, %arg3: memref<8x32xf32, #tpu.memory_space<vmem>>, %arg4: memref<8x32xf32, #tpu.memory_space<vmem>>) attributes {dimension_semantics = [#tpu.dimension_semantics<parallel>], iteration_bounds = array<i64: 1>, scalar_prefetch = 0 : i64, scratch_operands = 0 : i64, tpu.core_type = #tpu.core_type<tc>, window_params = [{transform_indices = @transform_0, window_bounds = array<i64: 1>}, {transform_indices = @transform_1, window_bounds = array<i64: 8, 32>}, {transform_indices = @transform_2, window_bounds = array<i64: 8, 32>}, {transform_indices = @transform_3, window_bounds = array<i64: 8, 32>}]} {
    %c0 = arith.constant 0 : index
    %0 = memref.load %arg1[%c0] : memref<1xf32, #tpu.memory_space<smem>>
    %c0_0 = arith.constant 0 : index
    %c0_1 = arith.constant 0 : index
    %1 = vector.load %arg2[%c0_0, %c0_1] : memref<8x32xf32, #tpu.memory_space<vmem>>, vector<8x32xf32>
    %2 = vector.broadcast %0 : f32 to vector<8x32xf32>
    %3 = arith.subf %1, %2 : vector<8x32xf32>
    %c0_2 = arith.constant 0 : index
    %c0_3 = arith.constant 0 : index
    %4 = vector.load %arg3[%c0_2, %c0_3] : memref<8x32xf32, #tpu.memory_space<vmem>>, vector<8x32xf32>
    tpu.vector_store %arg3[%c0_2, %c0_3], %3 {strides = array<i32>} : memref<8x32xf32, #tpu.memory_space<vmem>>, vector<8x32xf32>,
    %5 = vector.broadcast %0 : f32 to vector<8x32xf32>
    %6 = arith.addf %1, %5 : vector<8x32xf32>
    %c0_4 = arith.constant 0 : index
    %c0_5 = arith.constant 0 : index
    %7 = vector.load %arg4[%c0_4, %c0_5] : memref<8x32xf32, #tpu.memory_space<vmem>>, vector<8x32xf32>
    tpu.vector_store %arg4[%c0_4, %c0_5], %6 {strides = array<i32>} : memref<8x32xf32, #tpu.memory_space<vmem>>, vector<8x32xf32>,
    return
  }
  func.func @transform_0(%arg0: i32) -> i32 {
    %c0_i32 = arith.constant 0 : i32
    %c0_i32_0 = arith.constant 0 : i32
    return %c0_i32 : i32
  }
  func.func @transform_1(%arg0: i32) -> (i32, i32) {
    %c0_i32 = arith.constant 0 : i32
    %c0_i32_0 = arith.constant 0 : i32
    return %arg0, %c0_i32 : i32, i32
  }
  func.func @transform_2(%arg0: i32) -> (i32, i32) {
    %c0_i32 = arith.constant 0 : i32
    %c0_i32_0 = arith.constant 0 : i32
    return %arg0, %c0_i32 : i32, i32
  }
  func.func @transform_3(%arg0: i32) -> (i32, i32) {
    %c0_i32 = arith.constant 0 : i32
    %c0_i32_0 = arith.constant 0 : i32
    return %arg0, %c0_i32 : i32, i32
  }
}

</mosaic_0001>

<bundles_post_ra>
// kernel: _cp_direct.1
= control target key start
LH: loop header
LB: loop body
LE: loop exit
PB: predicated region body
PF: predicated region fallthrough
CT: control target
= control target key end

     0   :  { %10 = vsyncpa [#allocation4], 0  ;;  %s187_s0 = inlined_call_operand.<no memory space> [shape: f32[1], index: 0, kind: input, shape index: {}]   ;;  %s188_s1 = inlined_call_operand.hbm [shape: f32[8,32], index: 1, kind: input, shape index: {}]   ;;  %s189_s2 = inlined_call_operand.hbm [shape: f32[8,32], index: 2, kind: output, shape index: {0}]   ;;  %s190_s3 = inlined_call_operand.hbm [shape: f32[8,32], index: 3, kind: output, shape index: {1}]  }
   0x1   :  { %11 = vsyncpa [#allocation5], 0 }
   0x2   :  { %12 = vsyncpa [#allocation8], 0  ;;  %s20_s14 = sshll.u32 %s188_s1, 4  ;;  %s152_s15 = smov [#allocation3]   ;;  %s21_s14 = int_to_ptr.hbm [resolvable:$true] %s20_s14 }
   0x3   :  { %s22_s16 = sshll.u32 %s152_s15, 4  ;;  %s23_s16 = int_to_ptr.vmem [resolvable:$true] %s22_s16 }
   0x4   :  { %25 = dma.hbm_to_vmem [thread:$0]  %s21_s14, 128, %s23_s16, [#allocation4]  }
   0x5   :  { %146 = dma.done.wait [#allocation4], 128  }
   0x6   :  { %147 = vsyncadd [#allocation4], 4294967168  ;;  %v32_v0 = vstv %s187_s0  ;;  %s153_s19 = smov [#allocation6]   ;;  %s45_s23 = sshll.u32 %s189_s2, 4  ;;  %v31_v1 = vld [vmem:[#allocation3] sm:$0xff]  ;;  %vm34_vm0 = vcmask 261120   ;;  %s46_s23 = int_to_ptr.hbm [resolvable:$true] %s45_s23 }
   0x7   :  { %s43_s20 = sshll.u32 %s153_s19, 4  ;;  %s154_s24 = smov [#allocation7]   ;;  %v33_v2 = vsub.f32 %v31_v1, %v32_v0  ;;  %v36_v3 = vadd.f32 %v32_v0, %v31_v1  ;;  %s44_s20 = int_to_ptr.vmem [resolvable:$true] %s43_s20 }
   0x8   :  { %s54_s25 = sshll.u32 %s154_s24, 4  ;;  %s56_s27 = sshll.u32 %s190_s3, 4  ;;  %s55_s25 = int_to_ptr.vmem [resolvable:$true] %s54_s25  ;;  %s57_s27 = int_to_ptr.hbm [resolvable:$true] %s56_s27 }
   0x9   :  { %35 = vst.msk [vmem:[#allocation6] sm:$0xff] %vm34_vm0, %v33_v2 }
   0xa   :  { %37 = vst.msk [vmem:[#allocation7] sm:$0xff] %vm34_vm0, %v36_v3  ;;  %48 = dma.vmem_to_hbm [thread:$0]  %s44_s20, 128, %s46_s23, [#allocation5]  }
   0xb   :  { %59 = dma.vmem_to_hbm [thread:$0]  %s55_s25, 128, %s57_s27, [#allocation8]  }
   0xc   :  { %148 = dma.done.wait [#allocation5], 128  }
   0xd   :  { %149 = vsyncadd [#allocation5], 4294967168 }
   0xe   :  { %150 = dma.done.wait [#allocation8], 128  }
   0xf   :  { %151 = vsyncadd [#allocation8], 4294967168 }
  0x10   :  { %68 = vsyncpa [#allocation4], 1 }
  0x11   :  { %69 = vsyncpa [#allocation5], 1 }
  0x12   :  { %70 = vsyncpa [#allocation8], 1 }

</bundles_post_ra>
